<compile_context>
chip_gen: v7x
topology: tpu7x:2x2x1
jax: 0.10.0
libtpu: 0.0.40
codegen_flags: <defaults>
</compile_context>

<pallas_src>
import jax
import jax.numpy as jnp
from jax import lax
from jax.experimental import pallas as pl
from jax.experimental.pallas import tpu as pltpu

STATE_DIM = 33
ACTION_DIM = 25
HIDDEN_DIM = 64
HIDDEN_PAD = 128   # lane-dense hidden width
OUT_PAD = 128      # lane-dense output width (sliced to ACTION_DIM in wrapper)
BN_EPS = 1e-5


def fc_kernel(x_ref, w1_ref, w2_ref, w3_ref, pv_ref, out_ref):
    x = x_ref[...]                      # [B, STATE_DIM]
    pv = pv_ref[...]                    # [8, 128] packed per-feature vectors
    b1, g1, be1 = pv[0:1, :], pv[1:2, :], pv[2:3, :]
    b2, g2, be2 = pv[3:4, :], pv[4:5, :], pv[5:6, :]
    b3 = pv[6:7, :]

    inv_b = 1.0 / x.shape[0]            # static

    def relu_bn(h, gamma, beta):
        # ReLU then training-mode BatchNorm1d with fused affine.
        h = jnp.maximum(h, 0.0)
        mean = jnp.sum(h, axis=0, keepdims=True) * inv_b
        msq = jnp.sum(h * h, axis=0, keepdims=True) * inv_b
        var = jnp.maximum(msq - mean * mean, 0.0)       # biased variance
        scale = gamma * lax.rsqrt(var + BN_EPS)          # EUP rsqrt
        shift = beta - mean * scale
        return h * scale + shift

    # Layer 1: Linear + ReLU + BN   (padded hidden cols stay exactly 0: gamma=beta=0)
    h1 = jnp.dot(x, w1_ref[...], preferred_element_type=jnp.float32) + b1
    h1 = relu_bn(h1, g1, be1)

    # Layer 2: Linear + ReLU + BN
    h2 = jnp.dot(h1, w2_ref[...], preferred_element_type=jnp.float32) + b2
    h2 = relu_bn(h2, g2, be2)

    # Layer 3: Linear (lane-dense 128-wide store; real outputs are columns [:25])
    out = jnp.dot(h2, w3_ref[...], preferred_element_type=jnp.float32) + b3
    out_ref[...] = out.astype(out_ref.dtype)


def fc_forward(x, packed):
    """x: [B, STATE_DIM] f32.  packed: dict from pack_params()."""
    B = x.shape[0]
    vmem = pl.BlockSpec(memory_space=pltpu.MemorySpace.VMEM)
    out_pad = pl.pallas_call(
        fc_kernel,
        out_shape=jax.ShapeDtypeStruct((B, OUT_PAD), jnp.float32),
        in_specs=[vmem] * 5,
        out_specs=vmem,
        compiler_params=pltpu.CompilerParams(vmem_limit_bytes=32 * 1024 * 1024),
    )(x, packed["w1"], packed["w2"], packed["w3"], packed["pv"])
    return out_pad[:, :ACTION_DIM]


def init_raw_params(key):
    """Deterministic synthetic parameters (PyTorch-like uniform fan-in init)."""
    def linear(k, fan_in, fan_out):
        kw, kb = jax.random.split(k)
        bound = 1.0 / jnp.sqrt(fan_in)
        w = jax.random.uniform(kw, (fan_in, fan_out), jnp.float32, -bound, bound)
        b = jax.random.uniform(kb, (fan_out,), jnp.float32, -bound, bound)
        return w, b

    k1, k2, k3 = jax.random.split(key, 3)
    w1, b1 = linear(k1, STATE_DIM, HIDDEN_DIM)
    w2, b2 = linear(k2, HIDDEN_DIM, HIDDEN_DIM)
    w3, b3 = linear(k3, HIDDEN_DIM, ACTION_DIM)
    return dict(
        w1=w1, b1=b1, w2=w2, b2=b2, w3=w3, b3=b3,
        g1=jnp.ones((HIDDEN_DIM,), jnp.float32), be1=jnp.zeros((HIDDEN_DIM,), jnp.float32),
        g2=jnp.ones((HIDDEN_DIM,), jnp.float32), be2=jnp.zeros((HIDDEN_DIM,), jnp.float32),
    )


def pack_params(r):
    """Zero-pad weights to lane-dense widths and pack all per-feature vectors
    into one (8, 128) f32 tile (single DMA)."""
    w1 = jnp.zeros((STATE_DIM, HIDDEN_PAD), jnp.float32).at[:, :HIDDEN_DIM].set(r["w1"])
    w2 = jnp.zeros((HIDDEN_PAD, HIDDEN_PAD), jnp.float32).at[:HIDDEN_DIM, :HIDDEN_DIM].set(r["w2"])
    w3 = jnp.zeros((HIDDEN_PAD, OUT_PAD), jnp.float32).at[:HIDDEN_DIM, :ACTION_DIM].set(r["w3"])
    pv = jnp.zeros((8, HIDDEN_PAD), jnp.float32)
    pv = pv.at[0, :HIDDEN_DIM].set(r["b1"])
    pv = pv.at[1, :HIDDEN_DIM].set(r["g1"])
    pv = pv.at[2, :HIDDEN_DIM].set(r["be1"])
    pv = pv.at[3, :HIDDEN_DIM].set(r["b2"])
    pv = pv.at[4, :HIDDEN_DIM].set(r["g2"])
    pv = pv.at[5, :HIDDEN_DIM].set(r["be2"])
    pv = pv.at[6, :ACTION_DIM].set(r["b3"])
    return dict(w1=w1, w2=w2, w3=w3, pv=pv)


def fc_reference(x, r):
    """Pure-JAX reference (matches PyTorch training-mode forward)."""
    hi = lax.Precision.HIGHEST

    def bn(h, g, b):
        mean = jnp.mean(h, axis=0, keepdims=True)
        var = jnp.mean((h - mean) ** 2, axis=0, keepdims=True)
        return (h - mean) / jnp.sqrt(var + BN_EPS) * g + b

    h1 = bn(jnp.maximum(jnp.dot(x, r["w1"], precision=hi) + r["b1"], 0.0), r["g1"], r["be1"])
    h2 = bn(jnp.maximum(jnp.dot(h1, r["w2"], precision=hi) + r["b2"], 0.0), r["g2"], r["be2"])
    return jnp.dot(h2, r["w3"], precision=hi) + r["b3"]


if __name__ == "__main__":
    key = jax.random.PRNGKey(0)
    kx, kp = jax.random.split(key)

    B = 8  # >1 so training-mode batchnorm statistics are meaningful
    x = jax.random.normal(kx, (B, STATE_DIM), jnp.float32)
    raw = init_raw_params(kp)
    packed = pack_params(raw)

    out = fc_forward(x, packed)
    jax.block_until_ready(out)
    assert out.shape == (B, ACTION_DIM), out.shape

    ref = fc_reference(x, raw)
    assert jnp.allclose(out, ref, atol=1e-3, rtol=1e-3), float(jnp.max(jnp.abs(out - ref)))

    print("KERNEL_OK")
</pallas_src>

<mosaic_0001>
module attributes {stable_mosaic.version = 11 : i64} {
  func.func @fc_kernel(%arg0: memref<8x33xf32, #tpu.memory_space<vmem>>, %arg1: memref<33x128xf32, #tpu.memory_space<vmem>>, %arg2: memref<128x128xf32, #tpu.memory_space<vmem>>, %arg3: memref<128x128xf32, #tpu.memory_space<vmem>>, %arg4: memref<8x128xf32, #tpu.memory_space<vmem>>, %arg5: memref<8x128xf32, #tpu.memory_space<vmem>>) attributes {dimension_semantics = [], scalar_prefetch = 0 : i64, scratch_operands = 0 : i64, tpu.core_type = #tpu.core_type<tc>} {
    %c0 = arith.constant 0 : index
    %c0_0 = arith.constant 0 : index
    %0 = vector.load %arg0[%c0, %c0_0] : memref<8x33xf32, #tpu.memory_space<vmem>>, vector<8x33xf32>
    %c0_1 = arith.constant 0 : index
    %c0_2 = arith.constant 0 : index
    %1 = vector.load %arg4[%c0_1, %c0_2] : memref<8x128xf32, #tpu.memory_space<vmem>>, vector<8x128xf32>
    %2 = vector.extract_strided_slice %1 {offsets = [0, 0], sizes = [1, 128], strides = [1, 1]} : vector<8x128xf32> to vector<1x128xf32>
    %3 = vector.extract_strided_slice %1 {offsets = [1, 0], sizes = [1, 128], strides = [1, 1]} : vector<8x128xf32> to vector<1x128xf32>
    %4 = vector.extract_strided_slice %1 {offsets = [2, 0], sizes = [1, 128], strides = [1, 1]} : vector<8x128xf32> to vector<1x128xf32>
    %5 = vector.extract_strided_slice %1 {offsets = [3, 0], sizes = [1, 128], strides = [1, 1]} : vector<8x128xf32> to vector<1x128xf32>
    %6 = vector.extract_strided_slice %1 {offsets = [4, 0], sizes = [1, 128], strides = [1, 1]} : vector<8x128xf32> to vector<1x128xf32>
    %7 = vector.extract_strided_slice %1 {offsets = [5, 0], sizes = [1, 128], strides = [1, 1]} : vector<8x128xf32> to vector<1x128xf32>
    %8 = vector.extract_strided_slice %1 {offsets = [6, 0], sizes = [1, 128], strides = [1, 1]} : vector<8x128xf32> to vector<1x128xf32>
    %c0_3 = arith.constant 0 : index
    %c0_4 = arith.constant 0 : index
    %9 = vector.load %arg1[%c0_3, %c0_4] : memref<33x128xf32, #tpu.memory_space<vmem>>, vector<33x128xf32>
    %cst = arith.constant dense<0.000000e+00> : vector<8x128xf32>
    %10 = tpu.matmul %0, %9, %cst {dimension_numbers = #tpu.dot_dimension_numbers<[1], [0], [0], [1], [0, 0, 1, 1], [], []>} : vector<8x33xf32>, vector<33x128xf32>, vector<8x128xf32> -> vector<8x128xf32>
    %11 = vector.broadcast %2 : vector<1x128xf32> to vector<8x128xf32>
    %12 = arith.addf %10, %11 : vector<8x128xf32>
    %cst_5 = arith.constant 0.000000e+00 : f32
    %13 = vector.broadcast %cst_5 : f32 to vector<8x128xf32>
    %14 = arith.maximumf %12, %13 : vector<8x128xf32>
    %cst_6 = arith.constant dense<0.000000e+00> : vector<128xf32>
    %15 = vector.multi_reduction <add>, %14, %cst_6 [0] : vector<8x128xf32> to vector<128xf32>
    %16 = vector.shape_cast %15 : vector<128xf32> to vector<1x128xf32>
    %cst_7 = arith.constant 1.250000e-01 : f32
    %17 = vector.broadcast %cst_7 : f32 to vector<1x128xf32>
    %18 = arith.mulf %16, %17 : vector<1x128xf32>
    %19 = arith.mulf %14, %14 : vector<8x128xf32>
    %cst_8 = arith.constant dense<0.000000e+00> : vector<128xf32>
    %20 = vector.multi_reduction <add>, %19, %cst_8 [0] : vector<8x128xf32> to vector<128xf32>
    %21 = vector.shape_cast %20 : vector<128xf32> to vector<1x128xf32>
    %cst_9 = arith.constant 1.250000e-01 : f32
    %22 = vector.broadcast %cst_9 : f32 to vector<1x128xf32>
    %23 = arith.mulf %21, %22 : vector<1x128xf32>
    %24 = arith.mulf %18, %18 : vector<1x128xf32>
    %25 = arith.subf %23, %24 : vector<1x128xf32>
    %cst_10 = arith.constant 0.000000e+00 : f32
    %26 = vector.broadcast %cst_10 : f32 to vector<1x128xf32>
    %27 = arith.maximumf %25, %26 : vector<1x128xf32>
    %cst_11 = arith.constant 9.99999974E-6 : f32
    %28 = vector.broadcast %cst_11 : f32 to vector<1x128xf32>
    %29 = arith.addf %27, %28 : vector<1x128xf32>
    %30 = math.rsqrt %29 : vector<1x128xf32>
    %31 = arith.mulf %3, %30 : vector<1x128xf32>
    %32 = arith.mulf %18, %31 : vector<1x128xf32>
    %33 = arith.subf %4, %32 : vector<1x128xf32>
    %34 = vector.broadcast %31 : vector<1x128xf32> to vector<8x128xf32>
    %35 = arith.mulf %14, %34 : vector<8x128xf32>
    %36 = vector.broadcast %33 : vector<1x128xf32> to vector<8x128xf32>
    %37 = arith.addf %35, %36 : vector<8x128xf32>
    %c0_12 = arith.constant 0 : index
    %c0_13 = arith.constant 0 : index
    %38 = vector.load %arg2[%c0_12, %c0_13] : memref<128x128xf32, #tpu.memory_space<vmem>>, vector<128x128xf32>
    %cst_14 = arith.constant dense<0.000000e+00> : vector<8x128xf32>
    %39 = tpu.matmul %37, %38, %cst_14 {dimension_numbers = #tpu.dot_dimension_numbers<[1], [0], [0], [1], [0, 0, 1, 1], [], []>} : vector<8x128xf32>, vector<128x128xf32>, vector<8x128xf32> -> vector<8x128xf32>
    %40 = vector.broadcast %5 : vector<1x128xf32> to vector<8x128xf32>
    %41 = arith.addf %39, %40 : vector<8x128xf32>
    %cst_15 = arith.constant 0.000000e+00 : f32
    %42 = vector.broadcast %cst_15 : f32 to vector<8x128xf32>
    %43 = arith.maximumf %41, %42 : vector<8x128xf32>
    %cst_16 = arith.constant dense<0.000000e+00> : vector<128xf32>
    %44 = vector.multi_reduction <add>, %43, %cst_16 [0] : vector<8x128xf32> to vector<128xf32>
    %45 = vector.shape_cast %44 : vector<128xf32> to vector<1x128xf32>
    %cst_17 = arith.constant 1.250000e-01 : f32
    %46 = vector.broadcast %cst_17 : f32 to vector<1x128xf32>
    %47 = arith.mulf %45, %46 : vector<1x128xf32>
    %48 = arith.mulf %43, %43 : vector<8x128xf32>
    %cst_18 = arith.constant dense<0.000000e+00> : vector<128xf32>
    %49 = vector.multi_reduction <add>, %48, %cst_18 [0] : vector<8x128xf32> to vector<128xf32>
    %50 = vector.shape_cast %49 : vector<128xf32> to vector<1x128xf32>
    %cst_19 = arith.constant 1.250000e-01 : f32
    %51 = vector.broadcast %cst_19 : f32 to vector<1x128xf32>
    %52 = arith.mulf %50, %51 : vector<1x128xf32>
    %53 = arith.mulf %47, %47 : vector<1x128xf32>
    %54 = arith.subf %52, %53 : vector<1x128xf32>
    %cst_20 = arith.constant 0.000000e+00 : f32
    %55 = vector.broadcast %cst_20 : f32 to vector<1x128xf32>
    %56 = arith.maximumf %54, %55 : vector<1x128xf32>
    %cst_21 = arith.constant 9.99999974E-6 : f32
    %57 = vector.broadcast %cst_21 : f32 to vector<1x128xf32>
    %58 = arith.addf %56, %57 : vector<1x128xf32>
    %59 = math.rsqrt %58 : vector<1x128xf32>
    %60 = arith.mulf %6, %59 : vector<1x128xf32>
    %61 = arith.mulf %47, %60 : vector<1x128xf32>
    %62 = arith.subf %7, %61 : vector<1x128xf32>
    %63 = vector.broadcast %60 : vector<1x128xf32> to vector<8x128xf32>
    %64 = arith.mulf %43, %63 : vector<8x128xf32>
    %65 = vector.broadcast %62 : vector<1x128xf32> to vector<8x128xf32>
    %66 = arith.addf %64, %65 : vector<8x128xf32>
    %c0_22 = arith.constant 0 : index
    %c0_23 = arith.constant 0 : index
    %67 = vector.load %arg3[%c0_22, %c0_23] : memref<128x128xf32, #tpu.memory_space<vmem>>, vector<128x128xf32>
    %cst_24 = arith.constant dense<0.000000e+00> : vector<8x128xf32>
    %68 = tpu.matmul %66, %67, %cst_24 {dimension_numbers = #tpu.dot_dimension_numbers<[1], [0], [0], [1], [0, 0, 1, 1], [], []>} : vector<8x128xf32>, vector<128x128xf32>, vector<8x128xf32> -> vector<8x128xf32>
    %69 = vector.broadcast %8 : vector<1x128xf32> to vector<8x128xf32>
    %70 = arith.addf %68, %69 : vector<8x128xf32>
    %c0_25 = arith.constant 0 : index
    %c0_26 = arith.constant 0 : index
    %71 = vector.load %arg5[%c0_25, %c0_26] : memref<8x128xf32, #tpu.memory_space<vmem>>, vector<8x128xf32>
    tpu.vector_store %arg5[%c0_25, %c0_26], %70 {strides = array<i32>} : memref<8x128xf32, #tpu.memory_space<vmem>>, vector<8x128xf32>,
    return
  }
}

</mosaic_0001>

<bundles_post_ra>
// kernel: tpu_custom_call.1
= control target key start
LH: loop header
LB: loop body
LE: loop exit
PB: predicated region body
PF: predicated region fallthrough
CT: control target
= control target key end

     0   :  { %10 = vsyncpa [#allocation3], 0  ;;  %s897_s0 = inlined_call_operand.hbm [shape: f32[8,33], index: 0, kind: input, shape index: {}]   ;;  %s898_s1 = inlined_call_operand.hbm [shape: f32[33,128], index: 1, kind: input, shape index: {}]   ;;  %s899_s2 = inlined_call_operand.hbm [shape: f32[128,128], index: 2, kind: input, shape index: {}]   ;;  %s900_s3 = inlined_call_operand.hbm [shape: f32[128,128], index: 3, kind: input, shape index: {}]   ;;  %s901_s4 = inlined_call_operand.vmem [shape: f32[8,128], index: 4, kind: input, shape index: {}]   ;;  %s902_s5 = inlined_call_operand.hbm [shape: f32[8,128], index: 5, kind: output, shape index: {}]  }
   0x1   :  { %11 = vsyncpa [#allocation6], 0 }
   0x2   :  { %12 = vsyncpa [#allocation9], 0 }
   0x3   :  { %13 = vsyncpa [#allocation4], 0  ;;  %s746_s18 = smov [#allocation5]   ;;  %s628_s22 = scalar_lea.hbm %s898_s1, 640 }
   0x4   :  { %s29_s19 = sshll.u32 %s746_s18, 4  ;;  %p629_p0 = scmp.ne.s32.totalorder %s898_s1, %s628_s22  ;;  %s30_s19 = int_to_ptr.vmem [resolvable:$true] %s29_s19 }
   0x5   :  { %p632_p1 = scmp.lt.u32.totalorder %s628_s22, %s898_s1 }
   0x7   :  { %p634_p2 = pnand %p632_p1, %p629_p0 }
   0x9   :  { %637 = shalt.err (!%p634_p2)
}
   0xa   :  { %s638_s27 = scalar_lea.vmem %s30_s19, 640  ;;  %p643_p4 = scmp.lt.s32.totalorder %s30_s19, %s30_s19 }
   0xb   :  { %p639_p3 = scmp.ne.s32.totalorder %s30_s19, %s638_s27  ;;  %p644_p5 = scmp.lt.s32.totalorder %s638_s27, %s638_s27 }
   0xd   :  { %p645_p6 = por %p644_p5, %p643_p4 }
   0xf   :  { %p646_p7 = pnand %p645_p6, %p639_p3 }
  0x11   :  { %649 = shalt.err (!%p646_p7)
}
  0x12   :  { %s747_s28 = smov 128   ;;  %s748_s29 = smov 8  }
  0x13   :  { %35 = dma.hbm_to_vmem [thread:$0]  %s898_s1, 640, %s30_s19, [#allocation6], %s747_s28, %s747_s28, %s748_s29  }
  0x14   :  { %s749_s7 = smov [#allocation2]   ;;  %s750_s9 = smov [#allocation7]  }
  0x15   :  { %s20_s8 = sshll.u32 %s749_s7, 4  ;;  %s41_s10 = sshll.u32 %s750_s9, 4  ;;  %s21_s8 = int_to_ptr.vmem [resolvable:$true] %s20_s8  ;;  %s42_s10 = int_to_ptr.vmem [resolvable:$true] %s41_s10 }
  0x16   :  { %s650_s13 = scalar_lea.hbm %s897_s0, 128 }
  0x17   :  { %p651_p8 = scmp.ne.s32.totalorder %s897_s0, %s650_s13  ;;  %p654_p9 = scmp.lt.u32.totalorder %s650_s13, %s897_s0 }
  0x19   :  { %p656_p10 = pnand %p654_p9, %p651_p8 }
  0x1b   :  { %659 = shalt.err (!%p656_p10)
}
  0x1c   :  { %s660_s1 = scalar_lea.vmem %s21_s8, 128  ;;  %p665_p12 = scmp.lt.s32.totalorder %s21_s8, %s21_s8 }
  0x1d   :  { %p661_p11 = scmp.ne.s32.totalorder %s21_s8, %s660_s1  ;;  %p666_p13 = scmp.lt.s32.totalorder %s660_s1, %s660_s1 }
  0x1f   :  { %p667_p0 = por %p666_p13, %p665_p12 }
  0x21   :  { %p668_p1 = pnand %p667_p0, %p661_p11 }
  0x23   :  { %671 = shalt.err (!%p668_p1)
}
  0x24   :  { %23 = dma.hbm_to_vmem [thread:$0]  %s897_s0, 128, %s21_s8, [#allocation3]  }
  0x25   :  { %s672_s22 = scalar_lea.hbm %s899_s2, 2048 }
  0x26   :  { %p673_p2 = scmp.ne.s32.totalorder %s899_s2, %s672_s22  ;;  %p676_p3 = scmp.lt.u32.totalorder %s672_s22, %s899_s2 }
  0x28   :  { %p678_p4 = pnand %p676_p3, %p673_p2 }
  0x2a   :  { %681 = shalt.err (!%p678_p4)
}
  0x2b   :  { %s682_s27 = scalar_lea.vmem %s42_s10, 2048  ;;  %p687_p6 = scmp.lt.s32.totalorder %s42_s10, %s42_s10 }
  0x2c   :  { %p683_p5 = scmp.ne.s32.totalorder %s42_s10, %s682_s27  ;;  %p688_p7 = scmp.lt.s32.totalorder %s682_s27, %s682_s27 }
  0x2e   :  { %p689_p8 = por %p688_p7, %p687_p6 }
  0x30   :  { %p690_p9 = pnand %p689_p8, %p683_p5 }
  0x32   :  { %693 = shalt.err (!%p690_p9)
}
  0x33   :  { %47 = dma.hbm_to_vmem [thread:$0]  %s899_s2, 2048, %s42_s10, [#allocation6], %s747_s28, %s747_s28, %s748_s29  }
  0x34   :  { %s751_s6 = smov [#allocation8]   ;;  %s694_s11 = scalar_lea.hbm %s900_s3, 2048 }
  0x35   :  { %s53_s7 = sshll.u32 %s751_s6, 4  ;;  %p695_p10 = scmp.ne.s32.totalorder %s900_s3, %s694_s11  ;;  %s54_s7 = int_to_ptr.vmem [resolvable:$true] %s53_s7 }
  0x36   :  { %p698_p11 = scmp.lt.u32.totalorder %s694_s11, %s900_s3 }
  0x38   :  { %p700_p12 = pnand %p698_p11, %p695_p10 }
  0x3a   :  { %703 = shalt.err (!%p700_p12)
}
  0x3b   :  { %s704_s16 = scalar_lea.vmem %s54_s7, 2048  ;;  %p709_p0 = scmp.lt.s32.totalorder %s54_s7, %s54_s7 }
  0x3c   :  { %p705_p13 = scmp.ne.s32.totalorder %s54_s7, %s704_s16  ;;  %p710_p1 = scmp.lt.s32.totalorder %s704_s16, %s704_s16 }
  0x3e   :  { %p711_p2 = por %p710_p1, %p709_p0 }
  0x40   :  { %p712_p3 = pnand %p711_p2, %p705_p13 }
  0x42   :  { %715 = shalt.err (!%p712_p3)
}
  0x43   :  { %59 = dma.hbm_to_vmem [thread:$0]  %s900_s3, 2048, %s54_s7, [#allocation9], %s747_s28, %s747_s28, %s748_s29  }
  0x44   :  { %738 = dma.done.wait [#allocation3], 128  }
  0x45   :  { %739 = vsyncadd [#allocation3], 4294967168 }
  0x46   :  { %740 = dma.done.wait [#allocation6], 2688  }
  0x47   :  { %741 = vsyncadd [#allocation6], 4294964608 }
  0x48   :  { %742 = dma.done.wait [#allocation9], 2048  }
  0x49   :  { %743 = vsyncadd [#allocation9], 4294965248  ;;  %v752_v0 = vmov 0.0|0.0   ;;  %vm753_vm0 = vmmov 0   ;;  %v754_v1 = vmov 0.0   ;;  %v76_v2 = vld [vmem:[#allocation5] sm:$0xff]  ;;  %v81_v34 = vlaneseq }
  0x4a   :  { %560 = vmatprep.subr.bf16.mxu0 %v752_v0  ;;  %487 = vmatprep.mubr.msk.f32.mxu0 %vm753_vm0, %v754_v1  ;;  %v77_v3 = vld [vmem:[#allocation5 + $0x8] sm:$0xff]  ;;  %v78_v4 = vld [vmem:[#allocation5 + $0x10] sm:$0xff]  ;;  %v79_v6 = vld [vmem:[#allocation5 + $0x18] sm:$0xff]  ;;  %vm89_vm1 = vcmask 1040384   ;;  %vm85_vm2 = vcmask 269312  }
  0x4b   :  { %566 = vmatprep.subr.bf16.mxu1 %v752_v0  ;;  %522 = vmatprep.mubr.msk.f32.mxu1 %vm753_vm0, %v754_v1  ;;  %v561_v5 = vpack.c.bf16 %v77_v3, %v76_v2  ;;  %v564_v7 = vpack.c.bf16 %v79_v6, %v78_v4  ;;  %v80_v8 = vld [vmem:[#allocation5 + $0x20] sm:$0x1]  ;;  %v74_v9 = vld [vmem:[#allocation2] sm:$0xff]  ;;  %v200_v10 = vld [vmem:[#allocation7] sm:$0xff]  ;;  %v857_v35 = vshrl.u32 %v81_v34, 7 }
  0x4c   :  { %v201_v11 = vld [vmem:[#allocation7 + $0x8] sm:$0xff]  ;;  %v202_v13 = vld [vmem:[#allocation7 + $0x10] sm:$0xff]  ;;  %v203_v14 = vld [vmem:[#allocation7 + $0x18] sm:$0xff] }
  0x4d   :  { %562 = vmatpush3.bf16.msra.mxu0 %v561_v5  ;;  %v567_v12 = vpack.c.bf16 %v201_v11, %v200_v10  ;;  %v570_v15 = vpack.c.bf16 %v203_v14, %v202_v13  ;;  %v204_v16 = vld [vmem:[#allocation7 + $0x20] sm:$0xff]  ;;  %v205_v17 = vld [vmem:[#allocation7 + $0x28] sm:$0xff]  ;;  %v206_v19 = vld [vmem:[#allocation7 + $0x30] sm:$0xff]  ;;  %v83_v36 = vsub.s32 0, %v857_v35  ;;  %v197_v5 = vsub.s32 2, %v857_v35 }
  0x4e   :  { %563 = vmatprep.subr.bf16.mxu0 %v752_v0  ;;  %v573_v18 = vpack.c.bf16 %v205_v17, %v204_v16  ;;  %v207_v20 = vld [vmem:[#allocation7 + $0x38] sm:$0xff]  ;;  %v208_v22 = vld [vmem:[#allocation7 + $0x40] sm:$0xff]  ;;  %v209_v23 = vld [vmem:[#allocation7 + $0x48] sm:$0xff]  ;;  %v218_v34 = vsub.s32 3, %v857_v35 }
  0x4f   :  { %568 = vmatpush3.bf16.msra.mxu1 %v567_v12  ;;  %v576_v21 = vpack.c.bf16 %v207_v20, %v206_v19  ;;  %v579_v24 = vpack.c.bf16 %v209_v23, %v208_v22  ;;  %v210_v25 = vld [vmem:[#allocation7 + $0x50] sm:$0xff]  ;;  %v211_v26 = vld [vmem:[#allocation7 + $0x58] sm:$0xff]  ;;  %v212_v28 = vld [vmem:[#allocation7 + $0x60] sm:$0xff] }
  0x50   :  { %569 = vmatprep.subr.bf16.mxu1 %v752_v0  ;;  %v582_v27 = vpack.c.bf16 %v211_v26, %v210_v25  ;;  %v213_v29 = vld [vmem:[#allocation7 + $0x68] sm:$0xff]  ;;  %v214_v31 = vld [vmem:[#allocation7 + $0x70] sm:$0xff]  ;;  %v215_v32 = vld [vmem:[#allocation7 + $0x78] sm:$0xff] }
  0x51   :  { %565 = vmatpush3.bf16.msra.mxu0 %v564_v7  ;;  %v585_v30 = vpack.c.bf16 %v213_v29, %v212_v28  ;;  %v588_v33 = vpack.c.bf16 %v215_v32, %v214_v31  ;;  %v863_v37 = vld [vmem:[%s901_s4] sm:$0xff]  ;;  %v327_v10 = vld [vmem:[#allocation8] sm:$0xff]  ;;  %v328_v11 = vld [vmem:[#allocation8 + $0x8] sm:$0xff]  ;;  %s755_s4 = smov [#allocation10]  }
  0x52   :  { %485 = vmatprep.subr.mxu0 %v754_v1  ;;  %v84_v38 = vrot.slane %v863_v37, %v83_v36  ;;  %v591_v12 = vpack.c.bf16 %v328_v11, %v327_v10  ;;  %v329_v13 = vld [vmem:[#allocation8 + $0x10] sm:$0xff]  ;;  %v330_v14 = vld [vmem:[#allocation8 + $0x18] sm:$0xff]  ;;  %v331_v16 = vld [vmem:[#allocation8 + $0x20] sm:$0xff]  ;;  %v219_v36 = vrot.slane %v863_v37, %v218_v34  ;;  %s424_s29 = sshll.u32 %s755_s4, 4  ;;  %s425_s29 = int_to_ptr.vmem [resolvable:$true] %s424_s29 }
  0x53   :  { %571 = vmatpush3.bf16.msra.mxu1 %v570_v15  ;;  %v594_v15 = vpack.c.bf16 %v330_v14, %v329_v13  ;;  %v332_v17 = vld [vmem:[#allocation8 + $0x28] sm:$0xff]  ;;  %v333_v19 = vld [vmem:[#allocation8 + $0x30] sm:$0xff]  ;;  %v334_v20 = vld [vmem:[#allocation8 + $0x38] sm:$0xff]  ;;  %s716_s17 = scalar_lea.vmem %s425_s29, 128  ;;  %p721_p5 = scmp.lt.s32.totalorder %s425_s29, %s425_s29 }
  0x54   :  { %572 = vmatprep.subr.bf16.mxu1 %v752_v0  ;;  %v335_v22 = vld [vmem:[#allocation8 + $0x40] sm:$0xff]  ;;  %v336_v23 = vld [vmem:[#allocation8 + $0x48] sm:$0xff]  ;;  %v337_v25 = vld [vmem:[#allocation8 + $0x50] sm:$0xff]  ;;  %p717_p4 = scmp.ne.s32.totalorder %s425_s29, %s716_s17  ;;  %p722_p6 = scmp.lt.s32.totalorder %s716_s17, %s716_s17 }
  0x55   :  { %486 = vmatpush3.msk.msra.mxu0 %vm89_vm1, %v80_v8  ;;  %v338_v26 = vld [vmem:[#allocation8 + $0x58] sm:$0xff]  ;;  %v339_v28 = vld [vmem:[#allocation8 + $0x60] sm:$0xff]  ;;  %v340_v29 = vld [vmem:[#allocation8 + $0x68] sm:$0xff] }
  0x56   :  { %488 = vmatmul.mubr.msk.f32.vlgmr.msra.gmra.mrb[0].mxu0 %vm85_vm2, %v74_v9  ;;  %590 = vmatprep.subr.bf16.mxu0 %v752_v0  ;;  %v341_v31 = vld [vmem:[#allocation8 + $0x70] sm:$0xff]  ;;  %v342_v32 = vld [vmem:[#allocation8 + $0x78] sm:$0xff]  ;;  %p723_p7 = por %p722_p6, %p721_p5 }
  0x57   :  { %557 = vmatprep.mubr.msk.f32.mxu0 %vm753_vm0, %v754_v1  ;;  %574 = vmatpush3.bf16.msra.mxu1 %v573_v18  ;;  %v192_v1 = vsub.s32 1, %v857_v35  ;;  %v597_v18 = vpack.c.bf16 %v332_v17, %v331_v16 }
  0x58   :  { %575 = vmatprep.subr.bf16.mxu1 %v752_v0  ;;  %592 = vmatpush3.bf16.msra.mxu0 %v591_v12  ;;  %p724_p8 = pnand %p723_p7, %p717_p4 }
  0x59   :  { %593 = vmatprep.subr.bf16.mxu0 %v752_v0 }
  0x5b   :  { %577 = vmatpush3.bf16.msra.mxu1 %v576_v21  ;;  %v600_v21 = vpack.c.bf16 %v334_v20, %v333_v19 }
  0x5c   :  { %578 = vmatprep.subr.bf16.mxu1 %v752_v0  ;;  %595 = vmatpush3.bf16.msra.mxu0 %v594_v15 }
  0x5d   :  { %596 = vmatprep.subr.bf16.mxu0 %v752_v0 }
  0x5f   :  { %580 = vmatpush3.bf16.msra.mxu1 %v579_v24  ;;  %v603_v24 = vpack.c.bf16 %v336_v23, %v335_v22 }
  0x60   :  { %581 = vmatprep.subr.bf16.mxu1 %v752_v0  ;;  %598 = vmatpush3.bf16.msra.mxu0 %v597_v18 }
  0x61   :  { %599 = vmatprep.subr.bf16.mxu0 %v752_v0 }
  0x63   :  { %583 = vmatpush3.bf16.msra.mxu1 %v582_v27  ;;  %v606_v27 = vpack.c.bf16 %v338_v26, %v337_v25 }
  0x64   :  { %584 = vmatprep.subr.bf16.mxu1 %v752_v0  ;;  %601 = vmatpush3.bf16.msra.mxu0 %v600_v21 }
  0x65   :  { %602 = vmatprep.subr.bf16.mxu0 %v752_v0 }
  0x67   :  { %586 = vmatpush3.bf16.msra.mxu1 %v585_v30  ;;  %v609_v30 = vpack.c.bf16 %v340_v29, %v339_v28 }
  0x68   :  { %587 = vmatprep.subr.bf16.mxu1 %v752_v0  ;;  %604 = vmatpush3.bf16.msra.mxu0 %v603_v24 }
  0x69   :  { %605 = vmatprep.subr.bf16.mxu0 %v752_v0 }
  0x6b   :  { %589 = vmatpush3.bf16.msra.mxu1 %v588_v33  ;;  %v612_v33 = vpack.c.bf16 %v342_v32, %v341_v31 }
  0x6c   :  { %607 = vmatpush3.bf16.msra.mxu0 %v606_v27 }
  0x6d   :  { %608 = vmatprep.subr.bf16.mxu0 %v752_v0 }
  0x70   :  { %610 = vmatpush3.bf16.msra.mxu0 %v609_v30 }
  0x71   :  { %611 = vmatprep.subr.bf16.mxu0 %v752_v0 }
  0x74   :  { %613 = vmatpush3.bf16.msra.mxu0 %v612_v33 }
 0x129   :  { %v159_v39 = vpop.f32.mrb[0].mxu0 }
 0x12a   :  { %v160_v40 = vadd.f32 %v159_v39, %v84_v38  ;;  %v489_v41 = vpop.f32.mrb[1].mxu0 }
 0x12c   :  { %v163_v42 = vmax.f32 %v160_v40, 0.0 }
 0x12e   :  { %v164_v43 = vrot.slane %v163_v42, 4  ;;  %v171_v44 = vmul.f32 %v163_v42, %v163_v42 }
 0x130   :  { %v165_v45 = vadd.f32 %v164_v43, %v163_v42  ;;  %v172_v46 = vrot.slane %v171_v44, 4 }
 0x132   :  { %v166_v47 = vrot.slane %v165_v45, 2  ;;  %v173_v48 = vadd.f32 %v172_v46, %v171_v44 }
 0x134   :  { %v167_v49 = vadd.f32 %v166_v47, %v165_v45  ;;  %v174_v50 = vrot.slane %v173_v48, 2 }
 0x136   :  { %v168_v51 = vrot.slane %v167_v49, 1  ;;  %v175_v52 = vadd.f32 %v174_v50, %v173_v48 }
 0x138   :  { %v176_v53 = vrot.slane %v175_v52, 1  ;;  %v169_v54 = vadd.f32 %v168_v51, %v167_v49 }
 0x13a   :  { %v177_v55 = vadd.f32 %v176_v53, %v175_v52  ;;  %v170_v56 = vmul.f32 0.125, %v169_v54 }
 0x13c   :  { %v178_v57 = vmul.f32 0.125, %v177_v55  ;;  %v179_v58 = vmul.f32 %v170_v56, %v170_v56 }
 0x13e   :  { %v180_v59 = vsub.f32 %v178_v57, %v179_v58 }
 0x140   :  { %v181_v60 = vmax.f32 %v180_v59, 0.0 }
 0x142   :  { %v182_v61 = vadd.f32 1e-05, %v181_v60 }
 0x144   :  { %624 = vrsqrt.f32 %v182_v61 }
 0x14e   :  { %v625_v62 = vpop.eup %624 }
 0x14f   :  { %v184_v63 = vmul.f32 %v625_v62, %v863_v37  ;;  %v319_v62 = vsub.s32 4, %v857_v35 }
 0x151   :  { %v185_v2 = vmul.f32 %v184_v63, %v170_v56  ;;  %v193_v4 = vrot.slane %v184_v63, %v192_v1 }
 0x153   :  { %v187_v3 = vrot.slane %v185_v2, 7  ;;  %v194_v7 = vmul.f32 %v193_v4, %v163_v42 }
 0x155   :  { %v189_v6 = vsub.f32 %v863_v37, %v187_v3  ;;  %v324_v3 = vsub.s32 5, %v857_v35 }
 0x157   :  { %v198_v8 = vrot.slane %v189_v6, %v197_v5 }
 0x159   :  { %v199_v9 = vadd.f32 %v198_v8, %v194_v7  ;;  %v345_v8 = vsub.s32 6, %v857_v35 }
 0x15b   :  { %523 = vmatmul.mubr.f32.vlgmr.msra.gmra.mrb[0].mxu1 %v199_v9  ;;  %v346_v9 = vrot.slane %v863_v37, %v345_v8 }
 0x22e   :  { %v286_v38 = vpop.f32.mrb[0].mxu1 }
 0x22f   :  { %v287_v39 = vadd.f32 %v286_v38, %v219_v36  ;;  %v524_v40 = vpop.f32.mrb[1].mxu1 }
 0x231   :  { %v290_v41 = vmax.f32 %v287_v39, 0.0 }
 0x233   :  { %v291_v42 = vrot.slane %v290_v41, 4  ;;  %v298_v43 = vmul.f32 %v290_v41, %v290_v41 }
 0x235   :  { %v292_v44 = vadd.f32 %v291_v42, %v290_v41  ;;  %v299_v45 = vrot.slane %v298_v43, 4 }
 0x237   :  { %v293_v46 = vrot.slane %v292_v44, 2  ;;  %v300_v47 = vadd.f32 %v299_v45, %v298_v43 }
 0x239   :  { %v294_v48 = vadd.f32 %v293_v46, %v292_v44  ;;  %v301_v49 = vrot.slane %v300_v47, 2 }
 0x23b   :  { %v295_v50 = vrot.slane %v294_v48, 1  ;;  %v302_v51 = vadd.f32 %v301_v49, %v300_v47 }
 0x23d   :  { %v296_v0 = vadd.f32 %v295_v50, %v294_v48  ;;  %v303_v52 = vrot.slane %v302_v51, 1 }
 0x23f   :  { %v297_v53 = vmul.f32 0.125, %v296_v0  ;;  %v304_v54 = vadd.f32 %v303_v52, %v302_v51 }
 0x241   :  { %v305_v55 = vmul.f32 0.125, %v304_v54  ;;  %v306_v56 = vmul.f32 %v297_v53, %v297_v53 }
 0x243   :  { %v307_v57 = vsub.f32 %v305_v55, %v306_v56 }
 0x245   :  { %v308_v58 = vmax.f32 %v307_v57, 0.0 }
 0x247   :  { %v309_v59 = vadd.f32 1e-05, %v308_v58 }
 0x249   :  { %626 = vrsqrt.f32 %v309_v59 }
 0x253   :  { %v627_v60 = vpop.eup %626 }
 0x254   :  { %v311_v61 = vmul.f32 %v627_v60, %v863_v37 }
 0x256   :  { %v312_v63 = vmul.f32 %v311_v61, %v297_v53  ;;  %v320_v1 = vrot.slane %v311_v61, %v319_v62 }
 0x258   :  { %v314_v2 = vrot.slane %v312_v63, 7  ;;  %v321_v5 = vmul.f32 %v320_v1, %v290_v41 }
 0x25a   :  { %v316_v4 = vsub.f32 %v863_v37, %v314_v2 }
 0x25c   :  { %v325_v6 = vrot.slane %v316_v4, %v324_v3 }
 0x25e   :  { %v326_v7 = vadd.f32 %v325_v6, %v321_v5 }
 0x260   :  { %558 = vmatmul.mubr.f32.vlgmr.msra.gmra.mrb[2].mxu0 %v326_v7 }
 0x333   :  { %v413_v10 = vpop.f32.mrb[2].mxu0 }
 0x334   :  { %v414_v11 = vadd.f32 %v413_v10, %v346_v9  ;;  %v559_v12 = vpop.f32.mrb[3].mxu0 }
 0x336   :  { %417 = vst [vmem:[#allocation10] sm:$0xff] %v414_v11 }
 0x337   :  { %727 = shalt.err (!%p724_p8)
}
 0x338   :  { %s728_s19 = scalar_lea.hbm %s902_s5, 128 }
 0x339   :  { %p729_p9 = scmp.ne.s32.totalorder %s902_s5, %s728_s19  ;;  %p732_p10 = scmp.lt.u32.totalorder %s728_s19, %s902_s5 }
 0x33b   :  { %p734_p11 = pnand %p732_p10, %p729_p9 }
 0x33d   :  { %737 = shalt.err (!%p734_p11)
}
 0x33e   :  { %427 = dma.vmem_to_hbm [thread:$0]  %s425_s29, 128, %s902_s5, [#allocation4]  }
 0x33f   :  { %744 = dma.done.wait [#allocation4], 128  }
 0x340   :  { %745 = vsyncadd [#allocation4], 4294967168 }
 0x341   :  { %431 = vsyncpa [#allocation3], 1 }
 0x342   :  { %432 = vsyncpa [#allocation6], 1 }
 0x343   :  { %433 = vsyncpa [#allocation9], 1 }
 0x344   :  { %434 = vsyncpa [#allocation4], 1 }

</bundles_post_ra>
